<compile_context>
chip_gen: v7x
topology: tpu7x:2x2x1
jax: 0.10.0
libtpu: 0.0.40
codegen_flags: <defaults>
</compile_context>

<pallas_src>
import functools

import jax
import jax.numpy as jnp
from jax.experimental import pallas as pl
from jax.experimental.pallas import tpu as pltpu

_MASK_NEG = jnp.float32(-1e30)  # large finite negative; exp() underflows to 0.


def _mult_attention_kernel(p_ref, q_ref, wt_ref, mb_ref, out_ref, *, normalize: bool):
    """One batch tile.

    p_ref  : (TB, H, L)   p_seq transposed so H is on sublanes, L on lanes
    q_ref  : (TB, H+1)    q with a trailing ones column (bias folded into wt)
    wt_ref : (H+1, Hq)    [W^T ; bias] augmented weight
    mb_ref : (TB, L)      additive mask bias (0 for real tokens, -1e30 for pad)
    out_ref: (TB, L)
    """
    p_t = p_ref[...]                       # (TB, H, L) f32
    q_aug = q_ref[...]                     # (TB, H+1)  f32
    wt_aug = wt_ref[...]                   # (H+1, Hq)  f32
    mb = mb_ref[...]                       # (TB, L)    f32

    # Linear (bias folded): Wq = [q, 1] @ [W^T ; b]  -> (TB, Hq)     (MXU)
    wq = jnp.dot(q_aug, wt_aug, preferred_element_type=jnp.float32)

    # Batched matvec: pWq[b, l] = sum_h p[b, h, l] * Wq[b, h]
    # H sits on the sublane axis -> sublane reduce; result is lane-dense (L on lanes).
    pwq = jnp.sum(p_t * wq[:, :, None], axis=1) + mb            # (TB, L)

    if normalize:
        m = jnp.max(pwq, axis=-1, keepdims=True)
        e = jnp.exp(pwq - m)
        denom = jnp.sum(e, axis=-1, keepdims=True)
        out = e * pl.reciprocal(denom, approx=True)             # EUP vrcp
    else:
        out = jnp.exp(pwq)   # padded positions underflow to exactly 0

    out_ref[...] = out.astype(out_ref.dtype)


def _pick_batch_tile(B, L, H, budget_bytes=4 * 1024 * 1024):
    """Batch-tile size: fits the (double-buffered) working set well inside the
    default scoped VMEM limit on every generation (16 MiB v5e, 32 MiB v6e/v7x)."""
    per_batch_bytes = 4 * (H * L + (H + 1) + 2 * L)   # p + q + mask + out per row
    tb = max(1, budget_bytes // (2 * per_batch_bytes))  # 2x: double buffering
    if tb >= B:
        return B
    return max(8, (tb // 8) * 8)   # keep the second-minor (batch) dim 8-aligned


def multiplicative_attention(p_seq, q, p_mask, weight, bias, *, normalize=False):
    """
    p_seq:  (B, L, Hp) float32
    q:      (B, Hq)    float32   (module requires Hq == Hp)
    p_mask: (B, L)     int/bool  (1 for padding, 0 for true tokens)
    weight: (Hq, Hp)   float32   nn.Linear weight
    bias:   (Hq,)      float32   nn.Linear bias
    returns (B, L) float32 attention scores
    """
    B, L, Hp = p_seq.shape
    Hq, Hp_w = weight.shape
    assert Hp_w == Hp and Hq == Hp, (
        "MultiplicativeAttention assumes p_hidden_dim == q_hidden_dim "
        f"(got weight {weight.shape}, p_seq hidden {Hp})")
    assert q.shape == (B, Hq) and bias.shape == (Hq,) and p_mask.shape == (B, L)

    # --- layout plumbing (no compute hoisting) -------------------------------
    p_t = jnp.transpose(p_seq, (0, 2, 1))                         # (B, H, L)
    q_aug = jnp.concatenate([q, jnp.ones((B, 1), q.dtype)], -1)   # (B, H+1)
    wt_aug = jnp.concatenate([weight.T, bias[None, :]], 0)        # (H+1, Hq)
    mask_bias = p_mask.astype(jnp.float32) * _MASK_NEG            # (B, L)

    TB = _pick_batch_tile(B, L, Hp)
    grid = (pl.cdiv(B, TB),)

    grid_spec = pltpu.PrefetchScalarGridSpec(
        num_scalar_prefetch=0,
        grid=grid,
        in_specs=[
            pl.BlockSpec((TB, Hp, L), lambda i: (i, 0, 0)),   # p (streamed)
            pl.BlockSpec((TB, Hp + 1), lambda i: (i, 0)),     # q (per batch tile)
            pl.BlockSpec((Hp + 1, Hq), lambda i: (0, 0)),     # weight (resident)
            pl.BlockSpec((TB, L), lambda i: (i, 0)),          # mask bias
        ],
        out_specs=pl.BlockSpec((TB, L), lambda i: (i, 0)),
    )

    kernel = functools.partial(_mult_attention_kernel, normalize=normalize)
    return pl.pallas_call(
        kernel,
        out_shape=jax.ShapeDtypeStruct((B, L), jnp.float32),
        grid_spec=grid_spec,
        compiler_params=pltpu.CompilerParams(
            dimension_semantics=("parallel",),   # batch tiles shard across TCs on v7x
        ),
    )(p_t, q_aug, wt_aug, mask_bias)


def _reference(p_seq, q, p_mask, weight, bias, *, normalize=False):
    wq = q @ weight.T + bias
    pwq = jnp.einsum("blh,bh->bl", p_seq, wq)
    pwq = jnp.where(p_mask != 0, -jnp.inf, pwq)
    return jax.nn.softmax(pwq, axis=-1) if normalize else jnp.exp(pwq)


if __name__ == "__main__":
    key = jax.random.PRNGKey(0)
    B, L, H = 2, 8, 32      # p_hidden_dim == q_hidden_dim == 32 (Config default)

    k1, k2, k3, k4 = jax.random.split(key, 4)
    p_seq = jax.random.normal(k1, (B, L, H), dtype=jnp.float32)
    q = jax.random.normal(k2, (B, H), dtype=jnp.float32)
    # mask: last two positions of each sequence are padding
    p_mask = jnp.concatenate(
        [jnp.zeros((B, L - 2), jnp.int32), jnp.ones((B, 2), jnp.int32)], axis=-1)

    # Deterministic nn.Linear(H, H) parameters (synthetic, not a checkpoint).
    bound = 1.0 / jnp.sqrt(H)
    weight = jax.random.uniform(k3, (H, H), jnp.float32, -bound, bound)
    bias = jax.random.uniform(k4, (H,), jnp.float32, -bound, bound)

    # normalize=False (module default): must match torch semantics exactly.
    out = multiplicative_attention(p_seq, q, p_mask, weight, bias, normalize=False)
    out = jax.block_until_ready(out)
    ref = _reference(p_seq, q, p_mask, weight, bias, normalize=False)
    assert out.shape == (B, L)
    assert jnp.allclose(out, ref, rtol=1e-5, atol=1e-5), "mismatch vs reference (exp)"
    assert jnp.all(out[:, -2:] == 0.0), "padded positions must be exactly zero"

    # normalize=True path (approx reciprocal on the EUP -> looser tolerance).
    out_n = multiplicative_attention(p_seq, q, p_mask, weight, bias, normalize=True)
    out_n = jax.block_until_ready(out_n)
    ref_n = _reference(p_seq, q, p_mask, weight, bias, normalize=True)
    assert jnp.allclose(out_n, ref_n, rtol=1e-2, atol=1e-2), "mismatch vs reference (softmax)"
    assert jnp.all(out_n[:, -2:] == 0.0)

    print("KERNEL_OK")
</pallas_src>

<mosaic_0001>
module attributes {stable_mosaic.version = 11 : i64} {
  func.func @_mult_attention_kernel(%arg0: i32, %arg1: memref<2x32x8xf32, #tpu.memory_space<vmem>>, %arg2: memref<2x33xf32, #tpu.memory_space<vmem>>, %arg3: memref<33x32xf32, #tpu.memory_space<vmem>>, %arg4: memref<2x8xf32, #tpu.memory_space<vmem>>, %arg5: memref<2x8xf32, #tpu.memory_space<vmem>>) attributes {dimension_semantics = [#tpu.dimension_semantics<parallel>], iteration_bounds = array<i64: 1>, scalar_prefetch = 0 : i64, scratch_operands = 0 : i64, tpu.core_type = #tpu.core_type<tc>, window_params = [{transform_indices = @transform_0, window_bounds = array<i64: 2, 32, 8>}, {transform_indices = @transform_1, window_bounds = array<i64: 2, 33>}, {pipeline_mode = #tpu.pipeline_mode<synchronous>, transform_indices = @transform_2, window_bounds = array<i64: 33, 32>}, {transform_indices = @transform_3, window_bounds = array<i64: 2, 8>}, {transform_indices = @transform_4, window_bounds = array<i64: 2, 8>}]} {
    %c0 = arith.constant 0 : index
    %c0_0 = arith.constant 0 : index
    %c0_1 = arith.constant 0 : index
    %0 = vector.load %arg1[%c0, %c0_0, %c0_1] : memref<2x32x8xf32, #tpu.memory_space<vmem>>, vector<2x32x8xf32>
    %c0_2 = arith.constant 0 : index
    %c0_3 = arith.constant 0 : index
    %1 = vector.load %arg2[%c0_2, %c0_3] : memref<2x33xf32, #tpu.memory_space<vmem>>, vector<2x33xf32>
    %c0_4 = arith.constant 0 : index
    %c0_5 = arith.constant 0 : index
    %2 = vector.load %arg3[%c0_4, %c0_5] : memref<33x32xf32, #tpu.memory_space<vmem>>, vector<33x32xf32>
    %c0_6 = arith.constant 0 : index
    %c0_7 = arith.constant 0 : index
    %3 = vector.load %arg4[%c0_6, %c0_7] : memref<2x8xf32, #tpu.memory_space<vmem>>, vector<2x8xf32>
    %cst = arith.constant dense<0.000000e+00> : vector<2x32xf32>
    %4 = tpu.matmul %1, %2, %cst {dimension_numbers = #tpu.dot_dimension_numbers<[1], [0], [0], [1], [0, 0, 1, 1], [], []>} : vector<2x33xf32>, vector<33x32xf32>, vector<2x32xf32> -> vector<2x32xf32>
    %5 = vector.shape_cast %4 : vector<2x32xf32> to vector<2x32x1xf32>
    %6 = vector.broadcast %5 : vector<2x32x1xf32> to vector<2x32x8xf32>
    %7 = arith.mulf %0, %6 : vector<2x32x8xf32>
    %cst_8 = arith.constant dense<0.000000e+00> : vector<2x8xf32>
    %8 = vector.multi_reduction <add>, %7, %cst_8 [1] : vector<2x32x8xf32> to vector<2x8xf32>
    %9 = arith.addf %8, %3 : vector<2x8xf32>
    %10 = math.exp %9 : vector<2x8xf32>
    %c0_9 = arith.constant 0 : index
    %c0_10 = arith.constant 0 : index
    %11 = vector.load %arg5[%c0_9, %c0_10] : memref<2x8xf32, #tpu.memory_space<vmem>>, vector<2x8xf32>
    tpu.vector_store %arg5[%c0_9, %c0_10], %10 {strides = array<i32>} : memref<2x8xf32, #tpu.memory_space<vmem>>, vector<2x8xf32>,
    return
  }
  func.func @transform_0(%arg0: i32) -> (i32, i32, i32) {
    %c0_i32 = arith.constant 0 : i32
    %c0_i32_0 = arith.constant 0 : i32
    %c0_i32_1 = arith.constant 0 : i32
    return %arg0, %c0_i32, %c0_i32_0 : i32, i32, i32
  }
  func.func @transform_1(%arg0: i32) -> (i32, i32) {
    %c0_i32 = arith.constant 0 : i32
    %c0_i32_0 = arith.constant 0 : i32
    return %arg0, %c0_i32 : i32, i32
  }
  func.func @transform_2(%arg0: i32) -> (i32, i32) {
    %c0_i32 = arith.constant 0 : i32
    %c0_i32_0 = arith.constant 0 : i32
    %c0_i32_1 = arith.constant 0 : i32
    return %c0_i32, %c0_i32_0 : i32, i32
  }
  func.func @transform_3(%arg0: i32) -> (i32, i32) {
    %c0_i32 = arith.constant 0 : i32
    %c0_i32_0 = arith.constant 0 : i32
    return %arg0, %c0_i32 : i32, i32
  }
  func.func @transform_4(%arg0: i32) -> (i32, i32) {
    %c0_i32 = arith.constant 0 : i32
    %c0_i32_0 = arith.constant 0 : i32
    return %arg0, %c0_i32 : i32, i32
  }
}

</mosaic_0001>

<bundles_post_ra>
// kernel: tpu_custom_call.1
= control target key start
LH: loop header
LB: loop body
LE: loop exit
PB: predicated region body
PF: predicated region fallthrough
CT: control target
= control target key end

     0   :  { %v275_v3 = vmov 0.0|0.0   ;;  %vm276_vm0 = vmmov 0   ;;  %v277_v6 = vmov 0.0   ;;  %s369_s0 = inlined_call_operand.vmem [shape: f32[2,32,8], index: 0, kind: input, shape index: {}]   ;;  %s370_s1 = inlined_call_operand.vmem [shape: f32[2,33], index: 1, kind: input, shape index: {}]   ;;  %s371_s2 = inlined_call_operand.vmem [shape: f32[33,32], index: 2, kind: input, shape index: {}]   ;;  %s372_s3 = inlined_call_operand.vmem [shape: f32[2,8], index: 3, kind: input, shape index: {}]   ;;  %s373_s4 = inlined_call_operand.hbm [shape: f32[2,8], index: 4, kind: output, shape index: {}]  }
   0x1   :  { %v27_v0 = vld [vmem:[%s371_s2] sm:$0xff]  ;;  %v28_v1 = vld [vmem:[%s371_s2 + $0x8] sm:$0xff]  ;;  %v29_v2 = vld [vmem:[%s371_s2 + $0x10] sm:$0xff]  ;;  %237 = vmatprep.subr.bf16.mxu0 %v275_v3  ;;  %234 = vmatprep.mubr.msk.f32.mxu0 %vm276_vm0, %v277_v6 }
   0x2   :  { %v238_v4 = vpack.c.bf16 %v28_v1, %v27_v0  ;;  %v30_v5 = vld [vmem:[%s371_s2 + $0x18] sm:$0xff] }
   0x3   :  { %9 = vsyncpa [#allocation3], 0  ;;  %v241_v7 = vpack.c.bf16 %v30_v5, %v29_v2  ;;  %v31_v8 = vld [vmem:[%s371_s2 + $0x20] sm:$0x1]  ;;  %vm37_vm1 = vcmask 1040384   ;;  %vm33_vm2 = vcmask 269312   ;;  %v111_v10 = vlaneseq }
   0x4   :  { %239 = vmatpush3.bf16.msra.mxu0 %v238_v4  ;;  %v26_v9 = vld [vmem:[%s370_s1] sm:$0x3]  ;;  %v23_v20 = vld [vmem:[%s369_s0 + $0x28] sm:$0xff]  ;;  %v24_v28 = vld [vmem:[%s369_s0 + $0x30] sm:$0xff]  ;;  %vm157_vm3 = vcmask 64512   ;;  %s278_s16 = smov [#allocation2]  }
   0x5   :  { %240 = vmatprep.subr.bf16.mxu0 %v275_v3  ;;  %v112_v11 = vshrl.u32 %v111_v10, 7  ;;  %v19_v21 = vld [vmem:[%s369_s0 + $0x8] sm:$0xff]  ;;  %v22_v22 = vld [vmem:[%s369_s0 + $0x20] sm:$0xff]  ;;  %v20_v29 = vld [vmem:[%s369_s0 + $0x10] sm:$0xff]  ;;  %s208_s17 = sshll.u32 %s278_s16, 4  ;;  %vm197_vm4 = vcmask 1041409   ;;  %s209_s17 = int_to_ptr.vmem [resolvable:$true] %s208_s17 }
   0x6   :  { %v18_v23 = vld [vmem:[%s369_s0] sm:$0xff]  ;;  %v25_v38 = vld [vmem:[%s369_s0 + $0x38] sm:$0xff]  ;;  %vm200_vm5 = vcmask 58368   ;;  %p256_p1 = scmp.lt.s32.totalorder %s209_s17, %s209_s17 }
   0x7   :  { %v113_v12 = vsub.s32 0, %v112_v11  ;;  %v132_v13 = vsub.s32 1, %v112_v11  ;;  %v21_v39 = vld [vmem:[%s369_s0 + $0x18] sm:$0xff]  ;;  %v32_v62 = vld [vmem:[%s372_s3] sm:$0x3]  ;;  %s251_s3 = scalar_lea.vmem %s209_s17, 32 }
   0x8   :  { %242 = vmatpush3.bf16.msra.mxu0 %v241_v7  ;;  %v185_v3 = vrot.slane %v32_v62, 1  ;;  %p252_p0 = scmp.ne.s32.totalorder %s209_s17, %s251_s3  ;;  %p257_p2 = scmp.lt.s32.totalorder %s251_s3, %s251_s3 }
   0x9   :  { %232 = vmatprep.subr.mxu0 %v277_v6 }
   0xa   :  { %p258_p3 = por %p257_p2, %p256_p1 }
   0xc   :  { %233 = vmatpush3.msk.msra.mxu0 %vm37_vm1, %v31_v8  ;;  %p259_p4 = pnand %p258_p3, %p252_p0 }
   0xd   :  { %235 = vmatmul.mubr.msk.f32.vlgmr.msra.gmra.mrb[0].mxu0 %vm33_vm2, %v26_v9 }
  0xe0   :  { %v107_v14 = vpop.f32.mrb[0].mxu0 }
  0xe1   :  { %v114_v15 = vrot.slane %v107_v14, %v113_v12  ;;  %v133_v16 = vrot.slane %v107_v14, %v132_v13  ;;  %v236_v17 = vpop.f32.mrb[1].mxu0 }
  0xe3   :  { %135 = vbcast.lane.b32.xlu0 %v133_v16, 256  ;;  %116 = vbcast.lane.b32.xlu1 %v114_v15, 256 }
  0xe7   :  { %139 = vbcast.lane.b32.xlu0 %v133_v16, 264  ;;  %120 = vbcast.lane.b32.xlu1 %v114_v15, 264 }
  0xeb   :  { %143 = vbcast.lane.b32.xlu0 %v133_v16, 272  ;;  %124 = vbcast.lane.b32.xlu1 %v114_v15, 272 }
  0xef   :  { %147 = vbcast.lane.b32.xlu0 %v133_v16, 280  ;;  %128 = vbcast.lane.b32.xlu1 %v114_v15, 280 }
 0x155   :  { %v136_v18 = vpop.permute.xlu0 %135  ;;  %v117_v19 = vpop.permute.xlu1 %116 }
 0x156   :  { %v153_v30 = vmul.f32 %v136_v18, %v22_v22  ;;  %v149_v31 = vmul.f32 %v117_v19, %v18_v23 }
 0x158   :  { %v171_v40 = vsel %vm157_vm3, %v153_v30, 0.0  ;;  %v158_v41 = vsel %vm157_vm3, %v149_v31, 0.0 }
 0x159   :  { %v140_v24 = vpop.permute.xlu0 %139  ;;  %v121_v25 = vpop.permute.xlu1 %120 }
 0x15a   :  { %v154_v26 = vmul.f32 %v140_v24, %v23_v20  ;;  %v150_v27 = vmul.f32 %v121_v25, %v19_v21 }
 0x15c   :  { %v172_v34 = vsel %vm157_vm3, %v154_v26, 0.0  ;;  %v159_v35 = vsel %vm157_vm3, %v150_v27, 0.0 }
 0x15d   :  { %v144_v32 = vpop.permute.xlu0 %143  ;;  %v125_v33 = vpop.permute.xlu1 %124  ;;  %v173_v44 = vadd.f32 %v172_v34, %v171_v40  ;;  %v160_v45 = vadd.f32 %v159_v35, %v158_v41 }
 0x15e   :  { %v155_v36 = vmul.f32 %v144_v32, %v24_v28  ;;  %v151_v37 = vmul.f32 %v125_v33, %v20_v29 }
 0x160   :  { %v174_v42 = vsel %vm157_vm3, %v155_v36, 0.0  ;;  %v161_v43 = vsel %vm157_vm3, %v151_v37, 0.0 }
 0x161   :  { %v148_v46 = vpop.permute.xlu0 %147  ;;  %v129_v47 = vpop.permute.xlu1 %128  ;;  %v175_v50 = vadd.f32 %v174_v42, %v173_v44  ;;  %v162_v51 = vadd.f32 %v161_v43, %v160_v45 }
 0x162   :  { %v156_v48 = vmul.f32 %v148_v46, %v25_v38  ;;  %v152_v49 = vmul.f32 %v129_v47, %v21_v39 }
 0x164   :  { %v176_v52 = vsel %vm157_vm3, %v156_v48, 0.0  ;;  %v163_v53 = vsel %vm157_vm3, %v152_v49, 0.0 }
 0x165   :  { %v177_v54 = vadd.f32 %v176_v52, %v175_v50  ;;  %v164_v55 = vadd.f32 %v163_v53, %v162_v51 }
 0x167   :  { %v178_v56 = vrot.slane %v177_v54, 4  ;;  %v165_v57 = vrot.slane %v164_v55, 4 }
 0x169   :  { %v179_v58 = vadd.f32 %v178_v56, %v177_v54  ;;  %v166_v59 = vadd.f32 %v165_v57, %v164_v55 }
 0x16b   :  { %v180_v60 = vrot.slane %v179_v58, 2  ;;  %v167_v61 = vrot.slane %v166_v59, 2 }
 0x16d   :  { %v181_v63 = vadd.f32 %v180_v60, %v179_v58  ;;  %v168_v0 = vadd.f32 %v167_v61, %v166_v59 }
 0x16f   :  { %v182_v1 = vrot.slane %v181_v63, 1  ;;  %v169_v2 = vrot.slane %v168_v0, 1 }
 0x171   :  { %v183_v4 = vadd.f32 %v182_v1, %v181_v63  ;;  %v170_v5 = vadd.f32 %v169_v2, %v168_v0 }
 0x173   :  { %v188_v6 = vadd.f32 %v170_v5, %v32_v62  ;;  %v189_v7 = vadd.f32 %v185_v3, %v183_v4 }
 0x175   :  { %v192_v8 = vmul.f32 1.442695, %v189_v7  ;;  %v190_v9 = vmul.f32 1.442695, %v188_v6 }
 0x177   :  { %247 = vpow2.f32 %v192_v8 }
 0x178   :  { %249 = vpow2.f32 %v190_v9 }
 0x181   :  { %v248_v10 = vpop.eup %247 }
 0x182   :  { %v196_v11 = vrot.slane %v248_v10, 7  ;;  %v250_v12 = vpop.eup %249 }
 0x184   :  { %v198_v13 = vsel %vm197_vm4, %v196_v11, %v250_v12 }
 0x185   :  { %201 = vst.msk [vmem:[#allocation2] sm:$0x3] %vm200_vm5, %v198_v13 }
 0x186   :  { %262 = shalt.err (!%p259_p4)
}
 0x187   :  { %s263_s20 = scalar_lea.hbm %s373_s4, 32 }
 0x188   :  { %p264_p5 = scmp.ne.s32.totalorder %s373_s4, %s263_s20  ;;  %p267_p6 = scmp.lt.u32.totalorder %s263_s20, %s373_s4 }
 0x18a   :  { %p269_p7 = pnand %p267_p6, %p264_p5 }
 0x18c   :  { %272 = shalt.err (!%p269_p7)
}
 0x18d   :  { %211 = dma.vmem_to_hbm [thread:$0]  %s209_s17, 32, %s373_s4, [#allocation3]  }
 0x18e   :  { %273 = dma.done.wait [#allocation3], 32  }
 0x18f   :  { %274 = vsyncadd [#allocation3], 4294967264 }
 0x190   :  { %215 = vsyncpa [#allocation3], 1 }

</bundles_post_ra>
